<compile_context>
chip_gen: v7x
topology: tpu7x:2x2x1
jax: 0.10.0
libtpu: 0.0.40
codegen_flags: <defaults>
</compile_context>

<pallas_src>
import functools

import jax
import jax.numpy as jnp
from jax.experimental import pallas as pl
from jax.experimental.pallas import tpu as pltpu

_LANE = 128
_CHUNK_ROWS = 512           # rows per in-kernel compute chunk (256 KiB f32)
_MAX_TILE_ROWS = 16384      # upper bound on rows per DMA block


def _vmem_limit_bytes():
    """Scoped-VMEM limit to request, derived from the chip's physical VMEM."""
    phys = 64 << 20                       # conservative fallback (v7x-sized)
    try:
        info = pltpu.get_tpu_info()
        phys = int(getattr(info, "vmem_capacity_bytes", phys))
    except Exception:
        pass
    # 128 MiB chips (v5e/v6e) -> 48 MiB scoped; 64 MiB chips (v7x) -> 32 MiB.
    return int(min(phys // 2, 48 << 20))


def _num_tensorcores():
    """2 on v7x (2 TensorCores / chip), 1 on v5e / v6e."""
    try:
        kind = jax.devices()[0].device_kind.lower()
    except Exception:
        return 1
    return 2 if ("7x" in kind or "v7" in kind) else 1


def _l2_partial_kernel(x_ref, y_ref, part_ref, *, rows, tile_rows, chunk_rows,
                       steps_per_core, num_splits):
    if num_splits > 1:
        c = pl.program_id(0)      # core split (CORE_PARALLEL on v7x)
        i = pl.program_id(1)      # streaming step within this core's range
    else:
        c = 0
        i = pl.program_id(0)

    @pl.when(i == 0)
    def _():
        part_ref[...] = jnp.zeros_like(part_ref)

    tile_idx = c * steps_per_core + i          # un-clamped logical tile index
    n_chunks = tile_rows // chunk_rows

    def accumulate(masked):
        # Walk the (tile_rows, 128) VMEM block in chunk_rows-row chunks so the
        # live vector working set stays small regardless of DMA block size.
        @pl.loop(0, n_chunks)
        def _(k):
            r0 = pl.multiple_of(k * chunk_rows, chunk_rows)
            xc = x_ref[pl.ds(r0, chunk_rows), :].astype(jnp.float32)
            yc = y_ref[pl.ds(r0, chunk_rows), :].astype(jnp.float32)
            d = xc - yc
            sq = d * d
            if masked:
                # Zero rows past the logical end: covers the ragged last tile
                # and any clamped duplicate tile on the second core split.
                row_ids = (tile_idx * tile_rows + r0
                           + jax.lax.broadcasted_iota(jnp.int32, sq.shape, 0))
                sq = jnp.where(row_ids < rows, sq, 0.0)
            # Fold (chunk_rows, 128) onto the (8, 128) per-lane accumulator:
            # a stack of native f32 vreg tiles added elementwise (pure VPU).
            part_ref[...] += jnp.sum(
                sq.reshape(chunk_rows // 8, 8, _LANE), axis=0)

    needs_mask = (tile_idx + 1) * tile_rows > rows

    @pl.when(needs_mask)
    def _():
        accumulate(masked=True)

    @pl.when(jnp.logical_not(needs_mask))
    def _():
        accumulate(masked=False)


def _l2_partial_sums(x2d, y2d, rows, tile_rows, chunk_rows, num_splits,
                     vmem_limit):
    total_tiles = pl.cdiv(rows, tile_rows)
    steps_per_core = pl.cdiv(total_tiles, num_splits)

    kernel = functools.partial(
        _l2_partial_kernel, rows=rows, tile_rows=tile_rows,
        chunk_rows=chunk_rows, steps_per_core=steps_per_core,
        num_splits=num_splits)

    itemsize = max(x2d.dtype.itemsize, y2d.dtype.itemsize)
    n_main = rows * _LANE
    cost = pl.CostEstimate(flops=3 * n_main, transcendentals=0,
                           bytes_accessed=2 * n_main * itemsize)

    if num_splits > 1:
        def in_map(c, i):
            # Clamp so the DMA never targets a block fully outside the array;
            # the in-kernel mask zeroes any duplicated / overhanging rows.
            return (jnp.minimum(c * steps_per_core + i, total_tiles - 1), 0)

        grid = (num_splits, steps_per_core)
        in_specs = [pl.BlockSpec((tile_rows, _LANE), in_map)] * 2
        out_specs = pl.BlockSpec((8, _LANE), lambda c, i: (c, 0))
        out_shape = jax.ShapeDtypeStruct((num_splits * 8, _LANE), jnp.float32)
        semantics = (pltpu.CORE_PARALLEL, pltpu.ARBITRARY)
    else:
        grid = (steps_per_core,)
        in_specs = [pl.BlockSpec((tile_rows, _LANE), lambda i: (i, 0))] * 2
        out_specs = pl.BlockSpec((8, _LANE), lambda i: (0, 0))
        out_shape = jax.ShapeDtypeStruct((8, _LANE), jnp.float32)
        semantics = (pltpu.ARBITRARY,)

    return pl.pallas_call(
        kernel,
        out_shape=out_shape,
        grid=grid,
        in_specs=in_specs,
        out_specs=out_specs,
        compiler_params=pltpu.CompilerParams(
            dimension_semantics=semantics,
            vmem_limit_bytes=vmem_limit),
        cost_estimate=cost,
    )(x2d, y2d)


def l2_norm_loss(output, target, *, max_tile_rows=_MAX_TILE_ROWS):
    """sqrt(sum((output - target)**2)) — matches torch.norm(o - t, p=2)."""
    if output.shape != target.shape:
        raise ValueError("output and target must have the same shape")

    n = int(output.size)
    if n == 0:
        return jnp.zeros((), jnp.float32)

    x = output.reshape(-1)
    y = target.reshape(-1)

    rows = n // _LANE
    if rows < 8:
        # Below one (8, 128) tile: a kernel launch isn't worth it.
        d = x.astype(jnp.float32) - y.astype(jnp.float32)
        return jnp.sqrt(jnp.sum(d * d))

    # Ragged lane tail (< 128 elems): folded into the epilogue instead of
    # padding (which would write a full HBM copy of BOTH inputs).
    n_main = rows * _LANE
    if n_main == n:
        x_main, y_main = x, y                       # free reshape, no copy
        tail_sq = jnp.zeros((), jnp.float32)
    else:
        x_main, y_main = x[:n_main], y[:n_main]     # aligned prefix
        td = x[n_main:].astype(jnp.float32) - y[n_main:].astype(jnp.float32)
        tail_sq = jnp.sum(td * td)

    x2d = x_main.reshape(rows, _LANE)
    y2d = y_main.reshape(rows, _LANE)

    # Block-size selection: 2 inputs x 2 pipeline buffers must fit the scoped
    # VMEM budget, with headroom for the accumulator and in-kernel temporaries.
    itemsize = max(x2d.dtype.itemsize, y2d.dtype.itemsize)
    vmem_limit = _vmem_limit_bytes()
    input_budget = vmem_limit - (6 << 20)
    tr = min(max_tile_rows, input_budget // (4 * _LANE * itemsize))
    tr = min(tr, (rows // 8) * 8)       # never larger than the array
    tr = max(tr, 8)
    if tr >= _CHUNK_ROWS:
        tr = (tr // _CHUNK_ROWS) * _CHUNK_ROWS
        chunk = _CHUNK_ROWS
    else:
        chunk = tr

    total_tiles = pl.cdiv(rows, tr)
    splits = _num_tensorcores() if total_tiles >= 2 else 1

    try:
        partials = _l2_partial_sums(x2d, y2d, rows, tr, chunk, splits,
                                    vmem_limit)
    except Exception:
        if splits == 1:
            raise
        # Defensive fallback: if the 2-core split fails to compile on this
        # chip, fall back to the single-core streaming grid.
        partials = _l2_partial_sums(x2d, y2d, rows, tr, chunk, 1, vmem_limit)

    # Tiny epilogue: one cross-lane reduction + sqrt.
    return jnp.sqrt(jnp.sum(partials) + tail_sq)


if __name__ == "__main__":
    key = jax.random.PRNGKey(0)
    k1, k2 = jax.random.split(key)

    # Small shapes consistent with a conv/field-style output (NCHW).
    shape = (2, 4, 16, 16)
    output = jax.random.normal(k1, shape, dtype=jnp.float32)
    target = jax.random.normal(k2, shape, dtype=jnp.float32)

    loss = jax.block_until_ready(l2_norm_loss(output, target))

    # Correctness check vs. a pure-JAX reference of torch.norm(o - t, p=2).
    ref = jnp.sqrt(jnp.sum((output - target) ** 2))
    assert jnp.allclose(loss, ref, rtol=1e-5, atol=1e-5), (loss, ref)

    print("KERNEL_OK")
</pallas_src>

<mosaic_0001>
module attributes {stable_mosaic.version = 11 : i64} {
  func.func @_l2_partial_kernel(%arg0: i32, %arg1: memref<16x128xf32, #tpu.memory_space<vmem>>, %arg2: memref<16x128xf32, #tpu.memory_space<vmem>>, %arg3: memref<8x128xf32, #tpu.memory_space<vmem>>) attributes {dimension_semantics = [#tpu.dimension_semantics<arbitrary>], iteration_bounds = array<i64: 1>, scalar_prefetch = 0 : i64, scratch_operands = 0 : i64, tpu.core_type = #tpu.core_type<tc>, window_params = [{transform_indices = @transform_0, window_bounds = array<i64: 16, 128>}, {transform_indices = @transform_1, window_bounds = array<i64: 16, 128>}, {pipeline_mode = #tpu.pipeline_mode<synchronous>, transform_indices = @transform_2, window_bounds = array<i64: 8, 128>}]} {
    %c0_i32 = arith.constant 0 : i32
    %0 = arith.cmpi eq, %arg0, %c0_i32 : i32
    %1 = arith.extui %0 : i1 to i32
    %c0_i32_0 = arith.constant 0 : i32
    %2 = arith.cmpi ne, %1, %c0_i32_0 : i32
    scf.if %2 {
      %cst = arith.constant 0.000000e+00 : f32
      %12 = vector.broadcast %cst : f32 to vector<8x128xf32>
      %c0 = arith.constant 0 : index
      %c0_5 = arith.constant 0 : index
      %13 = vector.load %arg3[%c0, %c0_5] : memref<8x128xf32, #tpu.memory_space<vmem>>, vector<8x128xf32>
      tpu.vector_store %arg3[%c0, %c0_5], %12 {strides = array<i32>} : memref<8x128xf32, #tpu.memory_space<vmem>>, vector<8x128xf32>,
    } else {
    }
    %c0_i32_1 = arith.constant 0 : i32
    %3 = arith.addi %c0_i32_1, %arg0 : i32
    %c1_i32 = arith.constant 1 : i32
    %4 = arith.addi %3, %c1_i32 : i32
    %c16_i32 = arith.constant 16 : i32
    %5 = arith.muli %4, %c16_i32 : i32
    %c16_i32_2 = arith.constant 16 : i32
    %6 = arith.cmpi sgt, %5, %c16_i32_2 : i32
    %7 = arith.extui %6 : i1 to i32
    %c0_i32_3 = arith.constant 0 : i32
    %8 = arith.cmpi ne, %7, %c0_i32_3 : i32
    scf.if %8 {
      %c0_i32_5 = arith.constant 0 : i32
      %c1_i32_6 = arith.constant 1 : i32
      %12 = arith.muli %c0_i32_5, %c1_i32_6 : i32
      %c0_i32_7 = arith.constant 0 : i32
      %13 = arith.addi %c0_i32_7, %12 : i32
      %c16_i32_8 = arith.constant 16 : i32
      %14 = arith.muli %13, %c16_i32_8 : i32
      %15 = tpu.assume_multiple %14, 16 : i32
      %16 = arith.index_cast %15 : i32 to index
      %c0 = arith.constant 0 : index
      %17 = vector.load %arg1[%16, %c0] : memref<16x128xf32, #tpu.memory_space<vmem>>, vector<16x128xf32>
      %18 = arith.index_cast %15 : i32 to index
      %c0_9 = arith.constant 0 : index
      %19 = vector.load %arg2[%18, %c0_9] : memref<16x128xf32, #tpu.memory_space<vmem>>, vector<16x128xf32>
      %20 = arith.subf %17, %19 : vector<16x128xf32>
      %21 = arith.mulf %20, %20 : vector<16x128xf32>
      %c16_i32_10 = arith.constant 16 : i32
      %22 = arith.muli %3, %c16_i32_10 : i32
      %23 = arith.addi %22, %15 : i32
      %24 = tpu.iota {dimensions = array<i32: 0>} : vector<16x128xi32>
      %25 = vector.broadcast %23 : i32 to vector<16x128xi32>
      %26 = arith.addi %25, %24 : vector<16x128xi32>
      %c16_i32_11 = arith.constant 16 : i32
      %27 = vector.broadcast %c16_i32_11 : i32 to vector<16x128xi32>
      %28 = arith.cmpi slt, %26, %27 : vector<16x128xi32>
      %cst = arith.constant 0.000000e+00 : f32
      %29 = vector.broadcast %cst : f32 to vector<16x128xf32>
      %30 = arith.select %28, %21, %29 : vector<16x128xi1>, vector<16x128xf32>
      %c0_12 = arith.constant 0 : index
      %c0_13 = arith.constant 0 : index
      %31 = vector.load %arg3[%c0_12, %c0_13] : memref<8x128xf32, #tpu.memory_space<vmem>>, vector<8x128xf32>
      %32 = vector.shape_cast %30 : vector<16x128xf32> to vector<2x8x128xf32>
      %cst_14 = arith.constant dense<0.000000e+00> : vector<8x128xf32>
      %33 = vector.multi_reduction <add>, %32, %cst_14 [0] : vector<2x8x128xf32> to vector<8x128xf32>
      %34 = arith.addf %31, %33 : vector<8x128xf32>
      %c0_15 = arith.constant 0 : index
      %c0_16 = arith.constant 0 : index
      %35 = vector.load %arg3[%c0_15, %c0_16] : memref<8x128xf32, #tpu.memory_space<vmem>>, vector<8x128xf32>
      tpu.vector_store %arg3[%c0_15, %c0_16], %34 {strides = array<i32>} : memref<8x128xf32, #tpu.memory_space<vmem>>, vector<8x128xf32>,
      %c1_i32_17 = arith.constant 1 : i32
    } else {
    }
    %true = arith.constant true
    %9 = arith.xori %6, %true : i1
    %10 = arith.extui %9 : i1 to i32
    %c0_i32_4 = arith.constant 0 : i32
    %11 = arith.cmpi ne, %10, %c0_i32_4 : i32
    scf.if %11 {
      %c0_i32_5 = arith.constant 0 : i32
      %c1_i32_6 = arith.constant 1 : i32
      %12 = arith.muli %c0_i32_5, %c1_i32_6 : i32
      %c0_i32_7 = arith.constant 0 : i32
      %13 = arith.addi %c0_i32_7, %12 : i32
      %c16_i32_8 = arith.constant 16 : i32
      %14 = arith.muli %13, %c16_i32_8 : i32
      %15 = tpu.assume_multiple %14, 16 : i32
      %16 = arith.index_cast %15 : i32 to index
      %c0 = arith.constant 0 : index
      %17 = vector.load %arg1[%16, %c0] : memref<16x128xf32, #tpu.memory_space<vmem>>, vector<16x128xf32>
      %18 = arith.index_cast %15 : i32 to index
      %c0_9 = arith.constant 0 : index
      %19 = vector.load %arg2[%18, %c0_9] : memref<16x128xf32, #tpu.memory_space<vmem>>, vector<16x128xf32>
      %20 = arith.subf %17, %19 : vector<16x128xf32>
      %21 = arith.mulf %20, %20 : vector<16x128xf32>
      %c0_10 = arith.constant 0 : index
      %c0_11 = arith.constant 0 : index
      %22 = vector.load %arg3[%c0_10, %c0_11] : memref<8x128xf32, #tpu.memory_space<vmem>>, vector<8x128xf32>
      %23 = vector.shape_cast %21 : vector<16x128xf32> to vector<2x8x128xf32>
      %cst = arith.constant dense<0.000000e+00> : vector<8x128xf32>
      %24 = vector.multi_reduction <add>, %23, %cst [0] : vector<2x8x128xf32> to vector<8x128xf32>
      %25 = arith.addf %22, %24 : vector<8x128xf32>
      %c0_12 = arith.constant 0 : index
      %c0_13 = arith.constant 0 : index
      %26 = vector.load %arg3[%c0_12, %c0_13] : memref<8x128xf32, #tpu.memory_space<vmem>>, vector<8x128xf32>
      tpu.vector_store %arg3[%c0_12, %c0_13], %25 {strides = array<i32>} : memref<8x128xf32, #tpu.memory_space<vmem>>, vector<8x128xf32>,
      %c1_i32_14 = arith.constant 1 : i32
    } else {
    }
    return
  }
  func.func @transform_0(%arg0: i32) -> (i32, i32) {
    %c0_i32 = arith.constant 0 : i32
    %c0_i32_0 = arith.constant 0 : i32
    return %arg0, %c0_i32 : i32, i32
  }
  func.func @transform_1(%arg0: i32) -> (i32, i32) {
    %c0_i32 = arith.constant 0 : i32
    %c0_i32_0 = arith.constant 0 : i32
    return %arg0, %c0_i32 : i32, i32
  }
  func.func @transform_2(%arg0: i32) -> (i32, i32) {
    %c0_i32 = arith.constant 0 : i32
    %c0_i32_0 = arith.constant 0 : i32
    %c0_i32_1 = arith.constant 0 : i32
    return %c0_i32, %c0_i32_0 : i32, i32
  }
}

</mosaic_0001>

<bundles_post_ra>
// kernel: tpu_custom_call.1
= control target key start
LH: loop header
LB: loop body
LE: loop exit
PB: predicated region body
PF: predicated region fallthrough
CT: control target
= control target key end

     0   :  { %7 = vsyncpa [#allocation3], 0  ;;  %s241_s0 = inlined_call_operand.hbm [shape: f32[16,128], index: 0, kind: input, shape index: {}]   ;;  %s242_s1 = inlined_call_operand.hbm [shape: f32[16,128], index: 1, kind: input, shape index: {}]   ;;  %s243_s2 = inlined_call_operand.hbm [shape: f32[8,128], index: 2, kind: output, shape index: {}]  }
   0x1   :  { %8 = vsyncpa [#allocation6], 0 }
   0x2   :  { %9 = vsyncpa [#allocation4], 0  ;;  %s185_s9 = smov [#allocation2]   ;;  %s113_s13 = scalar_lea.hbm %s241_s0, 256 }
   0x3   :  { %s15_s10 = sshll.u32 %s185_s9, 4  ;;  %p114_p0 = scmp.ne.s32.totalorder %s241_s0, %s113_s13  ;;  %s16_s10 = int_to_ptr.vmem [resolvable:$true] %s15_s10 }
   0x4   :  { %p117_p1 = scmp.lt.u32.totalorder %s113_s13, %s241_s0 }
   0x6   :  { %p119_p2 = pnand %p117_p1, %p114_p0 }
   0x8   :  { %122 = shalt.err (!%p119_p2)
}
   0x9   :  { %s123_s18 = scalar_lea.vmem %s16_s10, 256  ;;  %p128_p4 = scmp.lt.s32.totalorder %s16_s10, %s16_s10 }
   0xa   :  { %p124_p3 = scmp.ne.s32.totalorder %s16_s10, %s123_s18  ;;  %p129_p5 = scmp.lt.s32.totalorder %s123_s18, %s123_s18 }
   0xc   :  { %p130_p6 = por %p129_p5, %p128_p4 }
   0xe   :  { %p131_p7 = pnand %p130_p6, %p124_p3 }
  0x10   :  { %134 = shalt.err (!%p131_p7)
}
  0x11   :  { %s186_s19 = smov 128   ;;  %s187_s20 = smov 8  }
  0x12   :  { %21 = dma.hbm_to_vmem [thread:$0]  %s241_s0, 256, %s16_s10, [#allocation3], %s186_s19, %s186_s19, %s187_s20  }
  0x13   :  { %s188_s23 = smov [#allocation5]   ;;  %s135_s27 = scalar_lea.hbm %s242_s1, 256 }
  0x14   :  { %s27_s24 = sshll.u32 %s188_s23, 4  ;;  %p136_p8 = scmp.ne.s32.totalorder %s242_s1, %s135_s27  ;;  %s28_s24 = int_to_ptr.vmem [resolvable:$true] %s27_s24 }
  0x15   :  { %p139_p9 = scmp.lt.u32.totalorder %s135_s27, %s242_s1 }
  0x17   :  { %p141_p10 = pnand %p139_p9, %p136_p8 }
  0x19   :  { %144 = shalt.err (!%p141_p10)
}
  0x1a   :  { %s145_s4 = scalar_lea.vmem %s28_s24, 256  ;;  %p150_p12 = scmp.lt.s32.totalorder %s28_s24, %s28_s24 }
  0x1b   :  { %p146_p11 = scmp.ne.s32.totalorder %s28_s24, %s145_s4  ;;  %p151_p13 = scmp.lt.s32.totalorder %s145_s4, %s145_s4 }
  0x1d   :  { %p152_p0 = por %p151_p13, %p150_p12 }
  0x1f   :  { %p153_p1 = pnand %p152_p0, %p146_p11 }
  0x21   :  { %156 = shalt.err (!%p153_p1)
}
  0x22   :  { %33 = dma.hbm_to_vmem [thread:$0]  %s242_s1, 256, %s28_s24, [#allocation6], %s186_s19, %s186_s19, %s187_s20  }
  0x23   :  { %179 = dma.done.wait [#allocation3], 256  }
  0x24   :  { %180 = vsyncadd [#allocation3], 4294967040 }
  0x25   :  { %181 = dma.done.wait [#allocation6], 256  }
  0x26   :  { %182 = vsyncadd [#allocation6], 4294967040  ;;  %v79_v0 = vld [vmem:[#allocation2] sm:$0xff]  ;;  %v80_v1 = vld [vmem:[#allocation2 + $0x8] sm:$0xff]  ;;  %s189_s6 = smov [#allocation7]  }
  0x27   :  { %v81_v2 = vld [vmem:[#allocation5] sm:$0xff]  ;;  %v82_v3 = vld [vmem:[#allocation5 + $0x8] sm:$0xff]  ;;  %s97_s7 = sshll.u32 %s189_s6, 4  ;;  %s98_s7 = int_to_ptr.vmem [resolvable:$true] %s97_s7 }
  0x28   :  { %v83_v4 = vsub.f32 %v79_v0, %v81_v2  ;;  %v84_v5 = vsub.f32 %v80_v1, %v82_v3  ;;  %s157_s8 = scalar_lea.vmem %s98_s7, 128  ;;  %p162_p3 = scmp.lt.s32.totalorder %s98_s7, %s98_s7 }
  0x29   :  { %p158_p2 = scmp.ne.s32.totalorder %s98_s7, %s157_s8  ;;  %p163_p4 = scmp.lt.s32.totalorder %s157_s8, %s157_s8 }
  0x2a   :  { %v85_v6 = vmul.f32 %v83_v4, %v83_v4  ;;  %v86_v7 = vmul.f32 %v84_v5, %v84_v5 }
  0x2b   :  { %p164_p5 = por %p163_p4, %p162_p3 }
  0x2c   :  { %v88_v8 = vadd.f32 %v86_v7, %v85_v6 }
  0x2d   :  { %p165_p6 = pnand %p164_p5, %p158_p2 }
  0x2e   :  { %90 = vst [vmem:[#allocation7] sm:$0xff] %v88_v8 }
  0x2f   :  { %168 = shalt.err (!%p165_p6)
}
  0x30   :  { %s169_s10 = scalar_lea.hbm %s243_s2, 128 }
  0x31   :  { %p170_p7 = scmp.ne.s32.totalorder %s243_s2, %s169_s10  ;;  %p173_p8 = scmp.lt.u32.totalorder %s169_s10, %s243_s2 }
  0x33   :  { %p175_p9 = pnand %p173_p8, %p170_p7 }
  0x35   :  { %178 = shalt.err (!%p175_p9)
}
  0x36   :  { %100 = dma.vmem_to_hbm [thread:$0]  %s98_s7, 128, %s243_s2, [#allocation4]  }
  0x37   :  { %183 = dma.done.wait [#allocation4], 128  }
  0x38   :  { %184 = vsyncadd [#allocation4], 4294967168 }
  0x39   :  { %104 = vsyncpa [#allocation3], 1 }
  0x3a   :  { %105 = vsyncpa [#allocation6], 1 }
  0x3b   :  { %106 = vsyncpa [#allocation4], 1 }

</bundles_post_ra>
